<compile_context>
chip_gen: v6e
topology: v6e:2x2x1
jax: 0.10.0
libtpu: 0.0.40
codegen_flags: <defaults>
</compile_context>

<pallas_src>
import numpy as np
import jax
import jax.numpy as jnp
from jax.experimental import pallas as pl
from jax.experimental.pallas import tpu as pltpu  # noqa: F401  (kept for optional core-parallel variant)


def _make_kernel(num_layers, p_drop, n_samples, B, seed):
    # Inverted-dropout constants as Python / numpy scalars -> jaxpr literals
    # (never captured jax.Array constants, the previous compile failure).
    p = float(p_drop)
    thresh = np.uint32(min(int(round(p * 4294967296.0)), 4294967295))
    inv_keep = (1.0 / (1.0 - p)) if p < 1.0 else 0.0
    seed32 = int(seed) & 0xFFFFFFFF
    MIX1 = np.uint32(0x7FEB352D)
    MIX2 = np.uint32(0x846CA68B)

    def kernel(x_ref, *refs):
        w_refs = refs[:num_layers]
        b_refs = refs[num_layers:2 * num_layers]
        out_ref = refs[2 * num_layers]

        # ---- layer 0: identical for every MC sample (dropout is applied
        # after the activation), so compute it once at batch size B. ----
        pre0 = jnp.dot(x_ref[...], w_refs[0][...],
                       preferred_element_type=jnp.float32) + b_refs[0][...]
        if num_layers == 1:
            out_ref[...] = pre0       # no hidden layer -> no dropout at all
            return
        h0 = jnp.maximum(pre0, 0.0)                        # (B, d1)

        # Counter-based uint32 hash; base linear index cached per shape so
        # the unrolled per-layer loop does not regenerate the iotas.
        base_cache = {}

        def rand_bits(shape, layer_idx):
            if shape not in base_cache:
                r = jax.lax.broadcasted_iota(jnp.uint32, shape, 0)
                c = jax.lax.broadcasted_iota(jnp.uint32, shape, 1)
                base_cache[shape] = r * np.uint32(shape[1]) + c
            key = np.uint32((seed32 * 0x9E3779B1
                             + (layer_idx + 1) * 0x85EBCA77) & 0xFFFFFFFF)
            v = base_cache[shape] + key
            v = v ^ (v >> 16)
            v = v * MIX1
            v = v ^ (v >> 15)
            v = v * MIX2
            v = v ^ (v >> 16)
            return v

        def dropout(vals, layer_idx, fuse_relu):
            if p <= 0.0:
                return jnp.maximum(vals, 0.0) if fuse_relu else vals
            keep = rand_bits(vals.shape, layer_idx) >= thresh
            if fuse_relu:
                keep = keep & (vals > 0.0)
            return jnp.where(keep, vals * inv_keep, 0.0)

        # ---- stack all MC samples along the matmul M dimension ----
        d1 = h0.shape[1]
        hs = jnp.broadcast_to(h0[None], (n_samples, B, d1))
        hs = hs.reshape(n_samples * B, d1)        # layout no-op when B == 8
        h = dropout(hs, 0, fuse_relu=False)       # per-sample mask on layer-0 act

        # ---- hidden layers: one big MXU matmul over all samples, fused
        # ReLU + inverted-dropout keep test. ----
        for i in range(1, num_layers - 1):
            pre = jnp.dot(h, w_refs[i][...],
                          preferred_element_type=jnp.float32) + b_refs[i][...]
            h = dropout(pre, i, fuse_relu=True)

        # ---- commute the MC mean with the (linear) last layer:
        # mean_s(h_s @ W + b) == mean_s(h_s) @ W + b.  The mean over the
        # major sample axis is a cheap vectorized vreg reduce. ----
        dh = h.shape[1]
        m = jnp.mean(h.reshape(n_samples, B, dh), axis=0)     # (B, dh)
        out_ref[...] = (jnp.dot(m, w_refs[-1][...],
                                preferred_element_type=jnp.float32)
                        + b_refs[-1][...])

    return kernel


def bayesian_mlp_forward(x, weights, biases, *, p_drop, n_samples, seed=0):
    """Eval-mode BayesianMlp forward: mean over n_samples MC-dropout passes.

    weights[i]: (in_features, out_features)   (transpose of nn.Linear.weight)
    biases[i]:  (1, out_features)
    """
    num_layers = len(weights)
    B, _ = x.shape
    out_dim = weights[-1].shape[1]

    kernel = _make_kernel(num_layers, float(p_drop), int(n_samples), B, seed)

    # Single invocation, no grid: every input/output and all per-sample
    # activations fit trivially in VMEM on v5e/v6e/v7x, so tiling would only
    # add per-step pipeline overhead.
    return pl.pallas_call(
        kernel,
        out_shape=jax.ShapeDtypeStruct((B, out_dim), jnp.float32),
    )(x.astype(jnp.float32),
      *[w.astype(jnp.float32) for w in weights],
      *[b.astype(jnp.float32) for b in biases])


if __name__ == "__main__":
    # Mirrors BayesianMlp(in_dim=32, hidden_dim=[64, 64], out_dim=8, fc_dropout=0.2)
    in_dim, hidden_dims, out_dim = 32, [64, 64], 8
    p_drop = 0.2
    batch = 8
    n_samples = 100   # PyTorch default for the eval-mode MC average

    dims = [in_dim] + list(hidden_dims) + [out_dim]

    # Deterministic parameter init (nn.Linear-style uniform bounds),
    # weights stored as (in_features, out_features).
    key = jax.random.PRNGKey(0)
    weights, biases = [], []
    for i in range(len(dims) - 1):
        key, kw, kb = jax.random.split(key, 3)
        bound = 1.0 / (dims[i] ** 0.5)
        weights.append(jax.random.uniform(
            kw, (dims[i], dims[i + 1]), jnp.float32, -bound, bound))
        biases.append(jax.random.uniform(
            kb, (1, dims[i + 1]), jnp.float32, -bound, bound))

    key, kx = jax.random.split(key)
    x = jax.random.normal(kx, (batch, in_dim), dtype=jnp.float32)

    # Sanity check: with p_drop=0 every MC sample equals the plain MLP
    # forward, so the kernel must match a pure-jnp reference.
    ref = x
    for i in range(len(weights)):
        ref = ref @ weights[i] + biases[i]
        if i < len(weights) - 1:
            ref = jnp.maximum(ref, 0.0)
    got = bayesian_mlp_forward(x, weights, biases,
                               p_drop=0.0, n_samples=4, seed=0)
    got = jax.block_until_ready(got)
    assert jnp.allclose(got, ref, atol=1e-4, rtol=1e-4), \
        float(jnp.max(jnp.abs(got - ref)))

    # MC-dropout eval-mode forward.
    out = bayesian_mlp_forward(x, weights, biases,
                               p_drop=p_drop, n_samples=n_samples, seed=1234)
    out = jax.block_until_ready(out)

    assert out.shape == (batch, out_dim), out.shape
    assert out.dtype == jnp.float32
    assert bool(jnp.all(jnp.isfinite(out)))
    print("KERNEL_OK")
</pallas_src>

<mosaic_0001>
module attributes {stable_mosaic.version = 11 : i64} {
  func.func @kernel(%arg0: memref<8x32xf32, #tpu.memory_space<vmem>>, %arg1: memref<32x64xf32, #tpu.memory_space<vmem>>, %arg2: memref<64x64xf32, #tpu.memory_space<vmem>>, %arg3: memref<64x8xf32, #tpu.memory_space<vmem>>, %arg4: memref<1x64xf32, #tpu.memory_space<vmem>>, %arg5: memref<1x64xf32, #tpu.memory_space<vmem>>, %arg6: memref<1x8xf32, #tpu.memory_space<vmem>>, %arg7: memref<8x8xf32, #tpu.memory_space<vmem>>) attributes {dimension_semantics = [], scalar_prefetch = 0 : i64, scratch_operands = 0 : i64, tpu.core_type = #tpu.core_type<tc>} {
    %c0 = arith.constant 0 : index
    %c0_0 = arith.constant 0 : index
    %0 = vector.load %arg0[%c0, %c0_0] : memref<8x32xf32, #tpu.memory_space<vmem>>, vector<8x32xf32>
    %c0_1 = arith.constant 0 : index
    %c0_2 = arith.constant 0 : index
    %1 = vector.load %arg1[%c0_1, %c0_2] : memref<32x64xf32, #tpu.memory_space<vmem>>, vector<32x64xf32>
    %cst = arith.constant dense<0.000000e+00> : vector<8x64xf32>
    %2 = tpu.matmul %0, %1, %cst {dimension_numbers = #tpu.dot_dimension_numbers<[1], [0], [0], [1], [0, 0, 1, 1], [], []>} : vector<8x32xf32>, vector<32x64xf32>, vector<8x64xf32> -> vector<8x64xf32>
    %c0_3 = arith.constant 0 : index
    %c0_4 = arith.constant 0 : index
    %3 = vector.load %arg4[%c0_3, %c0_4] : memref<1x64xf32, #tpu.memory_space<vmem>>, vector<1x64xf32>
    %4 = vector.broadcast %3 : vector<1x64xf32> to vector<8x64xf32>
    %5 = arith.addf %2, %4 : vector<8x64xf32>
    %cst_5 = arith.constant 0.000000e+00 : f32
    %6 = vector.broadcast %cst_5 : f32 to vector<8x64xf32>
    %7 = arith.maximumf %5, %6 : vector<8x64xf32>
    %8 = vector.shape_cast %7 : vector<8x64xf32> to vector<1x8x64xf32>
    %9 = vector.shape_cast %8 : vector<1x8x64xf32> to vector<1x8x64xf32>
    %10 = vector.broadcast %9 : vector<1x8x64xf32> to vector<4x8x64xf32>
    %11 = vector.shape_cast %10 : vector<4x8x64xf32> to vector<32x64xf32>
    %c0_6 = arith.constant 0 : index
    %c0_7 = arith.constant 0 : index
    %12 = vector.load %arg2[%c0_6, %c0_7] : memref<64x64xf32, #tpu.memory_space<vmem>>, vector<64x64xf32>
    %cst_8 = arith.constant dense<0.000000e+00> : vector<32x64xf32>
    %13 = tpu.matmul %11, %12, %cst_8 {dimension_numbers = #tpu.dot_dimension_numbers<[1], [0], [0], [1], [0, 0, 1, 1], [], []>} : vector<32x64xf32>, vector<64x64xf32>, vector<32x64xf32> -> vector<32x64xf32>
    %c0_9 = arith.constant 0 : index
    %c0_10 = arith.constant 0 : index
    %14 = vector.load %arg5[%c0_9, %c0_10] : memref<1x64xf32, #tpu.memory_space<vmem>>, vector<1x64xf32>
    %15 = vector.broadcast %14 : vector<1x64xf32> to vector<32x64xf32>
    %16 = arith.addf %13, %15 : vector<32x64xf32>
    %cst_11 = arith.constant 0.000000e+00 : f32
    %17 = vector.broadcast %cst_11 : f32 to vector<32x64xf32>
    %18 = arith.maximumf %16, %17 : vector<32x64xf32>
    %19 = vector.shape_cast %18 : vector<32x64xf32> to vector<4x8x64xf32>
    %cst_12 = arith.constant dense<0.000000e+00> : vector<8x64xf32>
    %20 = vector.multi_reduction <add>, %19, %cst_12 [0] : vector<4x8x64xf32> to vector<8x64xf32>
    %cst_13 = arith.constant 4.000000e+00 : f32
    %21 = vector.broadcast %cst_13 : f32 to vector<8x64xf32>
    %22 = arith.divf %20, %21 : vector<8x64xf32>
    %c0_14 = arith.constant 0 : index
    %c0_15 = arith.constant 0 : index
    %23 = vector.load %arg3[%c0_14, %c0_15] : memref<64x8xf32, #tpu.memory_space<vmem>>, vector<64x8xf32>
    %cst_16 = arith.constant dense<0.000000e+00> : vector<8x8xf32>
    %24 = tpu.matmul %22, %23, %cst_16 {dimension_numbers = #tpu.dot_dimension_numbers<[1], [0], [0], [1], [0, 0, 1, 1], [], []>} : vector<8x64xf32>, vector<64x8xf32>, vector<8x8xf32> -> vector<8x8xf32>
    %c0_17 = arith.constant 0 : index
    %c0_18 = arith.constant 0 : index
    %25 = vector.load %arg6[%c0_17, %c0_18] : memref<1x8xf32, #tpu.memory_space<vmem>>, vector<1x8xf32>
    %26 = vector.broadcast %25 : vector<1x8xf32> to vector<8x8xf32>
    %27 = arith.addf %24, %26 : vector<8x8xf32>
    %c0_19 = arith.constant 0 : index
    %c0_20 = arith.constant 0 : index
    %28 = vector.load %arg7[%c0_19, %c0_20] : memref<8x8xf32, #tpu.memory_space<vmem>>, vector<8x8xf32>
    tpu.vector_store %arg7[%c0_19, %c0_20], %27 {strides = array<i32>} : memref<8x8xf32, #tpu.memory_space<vmem>>, vector<8x8xf32>,
    return
  }
}

</mosaic_0001>

<bundles_post_ra>
// kernel: tpu_custom_call.1
= control target key start
LH: loop header
LB: loop body
LE: loop exit
PB: predicated region body
PF: predicated region fallthrough
CT: control target
= control target key end

     0   :  { %12 = vsyncpa [#allocation3], 0  ;;  %s624_s0 = inlined_call_operand.vmem [shape: f32[8,32], index: 0, kind: input, shape index: {}]   ;;  %s625_s1 = inlined_call_operand.hbm [shape: f32[32,64], index: 1, kind: input, shape index: {}]   ;;  %s626_s2 = inlined_call_operand.vmem [shape: f32[64,64], index: 2, kind: input, shape index: {}]   ;;  %s627_s3 = inlined_call_operand.vmem [shape: f32[64,8], index: 3, kind: input, shape index: {}]   ;;  %s628_s4 = inlined_call_operand.vmem [shape: f32[1,64], index: 4, kind: input, shape index: {}]   ;;  %s629_s5 = inlined_call_operand.vmem [shape: f32[1,64], index: 5, kind: input, shape index: {}]   ;;  %s630_s6 = inlined_call_operand.vmem [shape: f32[1,8], index: 6, kind: input, shape index: {}]   ;;  %s631_s7 = inlined_call_operand.hbm [shape: f32[8,8], index: 7, kind: output, shape index: {}]  }
   0x1   :  { %13 = vsyncpa [#allocation4], 0  ;;  %s487_s24 = smov [#allocation2]  }
   0x2   :  { %s21_s25 = sshll.u32 %s487_s24, 4  ;;  %s22_s25 = int_to_ptr.vmem [resolvable:$true] %s21_s25 }
   0x3   :  { %s451_s26 = scalar_lea.vmem %s22_s25, 512  ;;  %p456_p1 = scmp.lt.s32.totalorder %s22_s25, %s22_s25 }
   0x4   :  { %p452_p0 = scmp.ne.s32.totalorder %s22_s25, %s451_s26  ;;  %p457_p2 = scmp.lt.s32.totalorder %s451_s26, %s451_s26 }
   0x6   :  { %p458_p3 = por %p457_p2, %p456_p1 }
   0x8   :  { %p459_p4 = pnand %p458_p3, %p452_p0 }
   0xa   :  { %462 = shalt.err (!%p459_p4)
}
   0xb   :  { %s488_s27 = smov 128   ;;  %s489_s28 = smov 8  }
   0xc   :  { %27 = dma.hbm_to_vmem [thread:$0]  %s625_s1, 512, %s22_s25, [#allocation3], %s488_s27, %s488_s27, %s489_s28  }
   0xd   :  { %483 = dma.done.wait [#allocation3], 512  }
   0xe   :  { %484 = vsyncadd [#allocation3], 4294966784  ;;  %v490_v0 = vmov 0.0   ;;  %vm491_vm0 = vmmov 0   ;;  %v45_v1 = vld [vmem:[#allocation2 + $0x18] sm:$0xff]  ;;  %v44_v2 = vld [vmem:[#allocation2 + $0x10] sm:$0xff] }
   0xf   :  { %385 = vmatprep.subr.mxu0 %v490_v0  ;;  %393 = vmatprep.mubr.msk.f32.mxu0 %vm491_vm0, %v490_v0  ;;  %v135_v3 = vld [vmem:[%s626_s2 + $0x38] sm:$0xff]  ;;  %v43_v4 = vld [vmem:[#allocation2 + $0x8] sm:$0xff]  ;;  %v134_v5 = vld [vmem:[%s626_s2 + $0x30] sm:$0xff]  ;;  %vm53_vm1 = vcmask 261120   ;;  %vm143_vm2 = vcmask 523264   ;;  %s492_s18 = smov [#allocation5]  }
  0x10   :  { %386 = vmatpush3.msra.mxu0 %v45_v1  ;;  %396 = vmatprep.subr.mxu1 %v135_v3  ;;  %v133_v6 = vld [vmem:[%s626_s2 + $0x28] sm:$0xff]  ;;  %v42_v7 = vld [vmem:[#allocation2] sm:$0xff]  ;;  %v131_v10 = vld [vmem:[%s626_s2 + $0x18] sm:$0xff]  ;;  %vm333_vm3 = vcmask 64512  }
  0x11   :  { %387 = vmatprep.subr.mxu0 %v490_v0  ;;  %397 = vmatpush3.msra.mxu1 %v135_v3  ;;  %v41_v8 = vld [vmem:[%s624_s0] sm:$0xff]  ;;  %v130_v11 = vld [vmem:[%s626_s2 + $0x10] sm:$0xff]  ;;  %v129_v12 = vld [vmem:[%s626_s2 + $0x8] sm:$0xff]  ;;  %s341_s0 = sshll.u32 %s492_s18, 4  ;;  %s342_s0 = int_to_ptr.vmem [resolvable:$true] %s341_s0 }
  0x12   :  { %388 = vmatpush3.msra.mxu0 %v44_v2  ;;  %398 = vmatprep.subr.mxu1 %v134_v5  ;;  %v132_v9 = vld [vmem:[%s626_s2 + $0x20] sm:$0xff]  ;;  %v252_v19 = vld [vmem:[%s627_s3 + $0x38] sm:$0xff]  ;;  %v251_v20 = vld [vmem:[%s627_s3 + $0x30] sm:$0xff]  ;;  %s463_s19 = scalar_lea.vmem %s342_s0, 128  ;;  %p468_p6 = scmp.lt.s32.totalorder %s342_s0, %s342_s0 }
  0x13   :  { %389 = vmatprep.subr.mxu0 %v490_v0  ;;  %399 = vmatpush3.msra.mxu1 %v134_v5  ;;  %v128_v13 = vld [vmem:[%s626_s2] sm:$0xff]  ;;  %v250_v21 = vld [vmem:[%s627_s3 + $0x28] sm:$0xff]  ;;  %v248_v23 = vld [vmem:[%s627_s3 + $0x18] sm:$0xff]  ;;  %p464_p5 = scmp.ne.s32.totalorder %s342_s0, %s463_s19  ;;  %p469_p7 = scmp.lt.s32.totalorder %s463_s19, %s463_s19 }
  0x14   :  { %390 = vmatpush3.msra.mxu0 %v43_v4  ;;  %400 = vmatprep.subr.mxu1 %v133_v6  ;;  %v350_v14 = vld [vmem:[%s628_s4] ss:$0 sm:$0xff]  ;;  %v247_v24 = vld [vmem:[%s627_s3 + $0x10] sm:$0xff]  ;;  %v246_v25 = vld [vmem:[%s627_s3 + $0x8] sm:$0xff] }
  0x15   :  { %391 = vmatprep.subr.mxu0 %v490_v0  ;;  %401 = vmatpush3.msra.mxu1 %v133_v6  ;;  %v249_v22 = vld [vmem:[%s627_s3 + $0x20] sm:$0xff]  ;;  %p470_p8 = por %p469_p7, %p468_p6 }
  0x16   :  { %392 = vmatpush3.msra.mxu0 %v42_v7  ;;  %402 = vmatprep.subr.mxu1 %v132_v9  ;;  %v245_v26 = vld [vmem:[%s627_s3] sm:$0xff] }
  0x17   :  { %394 = vmatmul.mubr.msk.f32.vlgmr.msra.gmra.mxu0 %vm53_vm1, %v41_v8  ;;  %403 = vmatpush3.msra.mxu1 %v132_v9  ;;  %v352_v27 = vld [vmem:[%s629_s5] ss:$0 sm:$0xff]  ;;  %p471_p9 = pnand %p470_p8, %p464_p5 }
  0x18   :  { %418 = vmatprep.subr.mxu0 %v490_v0  ;;  %404 = vmatprep.subr.mxu1 %v131_v10  ;;  %v357_v48 = vld [vmem:[%s630_s6] ss:$0 sm:$0xff] }
  0x19   :  { %434 = vmatprep.mubr.msk.f32.mxu0 %vm491_vm0, %v490_v0  ;;  %405 = vmatpush3.msra.mxu1 %v131_v10 }
  0x1a   :  { %406 = vmatprep.subr.mxu1 %v130_v11  ;;  %419 = vmatpush3.msra.mxu0 %v252_v19 }
  0x1b   :  { %407 = vmatpush3.msra.mxu1 %v130_v11  ;;  %420 = vmatprep.subr.mxu0 %v490_v0 }
  0x1c   :  { %408 = vmatprep.subr.mxu1 %v129_v12  ;;  %421 = vmatpush3.msra.mxu0 %v251_v20 }
  0x1d   :  { %409 = vmatpush3.msra.mxu1 %v129_v12  ;;  %422 = vmatprep.subr.mxu0 %v490_v0 }
  0x1e   :  { %410 = vmatprep.subr.mxu1 %v128_v13  ;;  %423 = vmatpush3.msra.mxu0 %v250_v21 }
  0x1f   :  { %411 = vmatpush3.msra.mxu1 %v128_v13  ;;  %424 = vmatprep.subr.mxu0 %v490_v0 }
  0x20   :  { %425 = vmatpush3.msra.mxu0 %v249_v22 }
  0x21   :  { %426 = vmatprep.subr.mxu0 %v490_v0 }
  0x22   :  { %427 = vmatpush3.msra.mxu0 %v248_v23 }
  0x23   :  { %428 = vmatprep.subr.mxu0 %v490_v0 }
  0x24   :  { %429 = vmatpush3.msra.mxu0 %v247_v24 }
  0x25   :  { %430 = vmatprep.subr.mxu0 %v490_v0 }
  0x26   :  { %431 = vmatpush3.msra.mxu0 %v246_v25 }
  0x27   :  { %432 = vmatprep.subr.mxu0 %v490_v0 }
  0x28   :  { %433 = vmatpush3.msra.mxu0 %v245_v26 }
  0xd7   :  { %v123_v15 = vpop.f32.mrf.mxu0 }
  0xd8   :  { %v124_v16 = vadd.f32 %v350_v14, %v123_v15 }
  0xd9   :  { %v395_v17 = vpop.f32.mrf.mxu0 }
  0xda   :  { %v127_v18 = vmax.f32 %v124_v16, 0.0 }
  0xdc   :  { %412 = vmatprep.mubr.msk.f32.mxu1 %vm143_vm2, %v127_v18 }
  0xdd   :  { %413 = vmatmul.mubr.msk.f32.vlgmr.msra.gmra.mxu1 %vm143_vm2, %v127_v18 }
  0xde   :  { %415 = vmatprep.mubr.msk.f32.mxu1 %vm143_vm2, %v127_v18 }
  0xe1   :  { %416 = vmatmul.mubr.msk.f32.gmra.mxu1 %vm143_vm2, %v127_v18 }
 0x19d   :  { %v414_v28 = vpop.f32.mrf.mxu1 }
 0x19e   :  { %v219_v29 = vadd.f32 %v414_v28, %v352_v27 }
 0x19f   :  { %v213_v30 = vpop.f32.mrf.mxu1 }
 0x1a0   :  { %v214_v31 = vadd.f32 %v352_v27, %v213_v30  ;;  %v233_v33 = vmax.f32 %v219_v29, 0.0 }
 0x1a1   :  { %v417_v32 = vpop.f32.mrf.mxu1 }
 0x1a2   :  { %v232_v34 = vmax.f32 %v214_v31, 0.0  ;;  %v229_v35 = vadd.f32 %v417_v32, %v352_v27  ;;  %v237_v39 = vsel %vm143_vm2, %v233_v33, 0.0 }
 0x1a3   :  { %v223_v36 = vpop.f32.mrf.mxu1 }
 0x1a4   :  { %v236_v37 = vsel %vm143_vm2, %v232_v34, 0.0  ;;  %v224_v38 = vadd.f32 %v352_v27, %v223_v36  ;;  %v235_v40 = vmax.f32 %v229_v35, 0.0 }
 0x1a5   :  { %v238_v42 = vadd.f32 %v237_v39, %v236_v37 }
 0x1a6   :  { %v234_v41 = vmax.f32 %v224_v38, 0.0  ;;  %v241_v45 = vsel %vm143_vm2, %v235_v40, 0.0 }
 0x1a8   :  { %v239_v43 = vsel %vm143_vm2, %v234_v41, 0.0 }
 0x1a9   :  { %v240_v44 = vadd.f32 %v239_v43, %v238_v42 }
 0x1ab   :  { %v242_v46 = vadd.f32 %v241_v45, %v240_v44 }
 0x1ad   :  { %v244_v47 = vmul.f32 0.25, %v242_v46 }
 0x1af   :  { %435 = vmatmul.mubr.msk.f32.vlgmr.msra.gmra.mxu0 %vm143_vm2, %v244_v47 }
 0x26f   :  { %v329_v49 = vpop.f32.mrf.mxu0 }
 0x270   :  { %v330_v50 = vadd.f32 %v357_v48, %v329_v49 }
 0x271   :  { %v436_v51 = vpop.f32.mrf.mxu0 }
 0x272   :  { %334 = vst.msk [vmem:[#allocation5] sm:$0xff] %vm333_vm3, %v330_v50 }
 0x273   :  { %474 = shalt.err (!%p471_p9)
}
 0x274   :  { %344 = dma.vmem_to_hbm [thread:$0]  %s342_s0, 128, %s631_s7, [#allocation4]  }
 0x275   :  { %485 = dma.done.wait [#allocation4], 128  }
 0x276   :  { %486 = vsyncadd [#allocation4], 4294967168 }
 0x277   :  { %348 = vsyncpa [#allocation3], 1 }
 0x278   :  { %349 = vsyncpa [#allocation4], 1 }

</bundles_post_ra>
